<compile_context>
chip_gen: v7x
topology: tpu7x:2x2x1
jax: 0.10.0
libtpu: 0.0.40
codegen_flags: <defaults>
</compile_context>

<pallas_src>
import functools

import jax
import jax.numpy as jnp
from jax import lax
from jax.experimental import pallas as pl
from jax.experimental.pallas import tpu as pltpu


def _int_pow(x, n: int):
    """x**n for small positive integer n via repeated multiplies (torch semantics)."""
    acc = None
    base = x
    m = n
    while m > 0:
        if m & 1:
            acc = base if acc is None else acc * base
        m >>= 1
        if m:
            base = base * base
    return acc


def _normalize_kernel(x_ref, o_ref, *, power: float, int_power):
    x = x_ref[...]
    xf = x.astype(jnp.float32)
    if power == 2.0:
        s = jnp.sum(xf * xf, axis=-1, keepdims=True)
        inv = lax.rsqrt(s)                       # EUP slot; x * rsqrt(sum x^2)
    else:
        if int_power is not None:
            xp = _int_pow(xf, int_power)         # no NaN for negative x (matches torch)
        else:
            xp = jnp.power(xf, power)            # fractional p: NaN for x<0, same as torch
        s = jnp.sum(xp, axis=-1, keepdims=True)
        inv = jnp.power(s, -1.0 / power)         # per-row only -> cheap
    if x.dtype == jnp.float32:
        o_ref[...] = xf * inv
    else:
        # bf16 etc.: f32 accumulation above, native-dtype scaling here
        # (saves a full-tile f32 mirror on v6e/v7x).
        o_ref[...] = (x * inv.astype(x.dtype)).astype(o_ref.dtype)


def _vmem_budget_limit_cores():
    """Generation-aware (tile budget, vmem_limit_bytes, #TensorCores)."""
    vmem_cap = 64 << 20                          # conservative default (v7x per-TC)
    try:
        info = pltpu.get_tpu_info()
        vmem_cap = int(getattr(info, "vmem_capacity_bytes", vmem_cap))
    except Exception:
        pass
    if vmem_cap >= (100 << 20):                  # v5e / v6e: 128 MiB, 1 TC
        return 48 << 20, 96 << 20, 1
    return 20 << 20, 48 << 20, 2                 # v7x: 64 MiB per TC, 2 TCs


def _choose_row_tile(N: int, D: int, itemsize: int, pack: int,
                     budget: int, num_tc: int) -> int:
    # Live VMEM per row: double-buffered in + out (native dtype) plus ~3 f32
    # full-tile temporaries (x_f32, x^p, pre-cast out).
    bytes_per_row = D * (4 * itemsize + 3 * 4)
    max_rows = max(pack, (budget // max(1, bytes_per_row)) // pack * pack)
    # Byte target: >= ~4 MiB input blocks keep DMAs efficient and amortize
    # per-grid-step overhead (main lever for small D).
    target_rows = max(pack, ((4 << 20) // (D * itemsize)) // pack * pack)
    tm = min(max_rows, target_rows)

    if tm >= N:
        if num_tc >= 2 and N >= 2 * pack:
            # Two balanced blocks so both v7x TensorCores get work.
            tm = ((N + 1) // 2 + pack - 1) // pack * pack
        else:
            tm = N                               # one block; full dim => always legal
    elif num_tc >= 2:
        steps = pl.cdiv(N, tm)
        if steps > 1 and steps % 2 == 1:
            # Prefer an even number of grid steps on 2-TC chips.
            tm_alt = (pl.cdiv(N, steps + 1) + pack - 1) // pack * pack
            if tm_alt >= pack:
                tm = tm_alt
    return tm


def normalize(x: jax.Array, power=2.0) -> jax.Array:
    """L_p-normalize each row of x (N, D) along the last axis (PyTorch dim=1)."""
    if x.ndim != 2:
        # TODO(synk): N-D inputs (channel reduction with trailing spatial dims)
        # would need a transposed layout or a channel-axis reduction kernel.
        raise ValueError("normalize expects a 2-D (N, D) input")
    if not jnp.issubdtype(x.dtype, jnp.floating):
        x = x.astype(jnp.float32)                # torch promotes int inputs to float

    N, D = x.shape
    itemsize = jnp.dtype(x.dtype).itemsize
    pack = 8 * max(1, 4 // itemsize)             # sublane pack: 8 f32 / 16 bf16

    p = float(power)
    int_p = int(p) if (p.is_integer() and 1 <= p <= 16) else None

    budget, vmem_limit, num_tc = _vmem_budget_limit_cores()
    tm = _choose_row_tile(N, D, itemsize, pack, budget, num_tc)
    grid = pl.cdiv(N, tm)

    kernel = functools.partial(_normalize_kernel, power=p, int_power=int_p)
    return pl.pallas_call(
        kernel,
        out_shape=jax.ShapeDtypeStruct((N, D), x.dtype),
        grid_spec=pltpu.PrefetchScalarGridSpec(
            num_scalar_prefetch=0,
            grid=(grid,),
            in_specs=[pl.BlockSpec((tm, D), lambda i: (i, 0))],
            out_specs=pl.BlockSpec((tm, D), lambda i: (i, 0)),
        ),
        compiler_params=pltpu.CompilerParams(
            dimension_semantics=("parallel",),
            vmem_limit_bytes=vmem_limit,
        ),
    )(x)


if __name__ == "__main__":
    key = jax.random.PRNGKey(0)
    k1, k2, k3 = jax.random.split(key, 3)

    # Case 1: aligned shapes (batch=8, dim=128), p=2.
    x1 = jax.random.normal(k1, (8, 128), dtype=jnp.float32)
    o1 = jax.block_until_ready(normalize(x1, power=2))
    r1 = x1 / jnp.sqrt(jnp.sum(x1 * x1, axis=1, keepdims=True))
    assert o1.shape == x1.shape and o1.dtype == x1.dtype
    assert jnp.max(jnp.abs(o1 - r1)) < 1e-5

    # Case 2: ragged rows and lanes (13, 96), p=2 -- no host-side padding.
    x2 = jax.random.normal(k2, (13, 96), dtype=jnp.float32)
    o2 = jax.block_until_ready(normalize(x2, power=2))
    r2 = x2 / jnp.sqrt(jnp.sum(x2 * x2, axis=1, keepdims=True))
    assert o2.shape == x2.shape and jnp.max(jnp.abs(o2 - r2)) < 1e-5

    # Case 3: generic integer power p=3 (positive inputs).
    x3 = jnp.abs(jax.random.normal(k3, (16, 96), dtype=jnp.float32)) + 0.1
    o3 = jax.block_until_ready(normalize(x3, power=3))
    r3 = x3 / jnp.power(jnp.sum(x3 * x3 * x3, axis=1, keepdims=True), 1.0 / 3.0)
    assert o3.shape == x3.shape and jnp.max(jnp.abs(o3 - r3)) < 1e-4

    print("KERNEL_OK")
</pallas_src>

<mosaic_0001>
module attributes {stable_mosaic.version = 11 : i64} {
  func.func @_normalize_kernel(%arg0: i32, %arg1: memref<8x128xf32, #tpu.memory_space<vmem>>, %arg2: memref<8x128xf32, #tpu.memory_space<vmem>>) attributes {dimension_semantics = [#tpu.dimension_semantics<parallel>], iteration_bounds = array<i64: 1>, scalar_prefetch = 0 : i64, scratch_operands = 0 : i64, tpu.core_type = #tpu.core_type<tc>, window_params = [{transform_indices = @transform_0, window_bounds = array<i64: 8, 128>}, {transform_indices = @transform_1, window_bounds = array<i64: 8, 128>}]} {
    %c0 = arith.constant 0 : index
    %c0_0 = arith.constant 0 : index
    %0 = vector.load %arg1[%c0, %c0_0] : memref<8x128xf32, #tpu.memory_space<vmem>>, vector<8x128xf32>
    %1 = arith.mulf %0, %0 : vector<8x128xf32>
    %cst = arith.constant dense<0.000000e+00> : vector<8xf32>
    %2 = vector.multi_reduction <add>, %1, %cst [1] : vector<8x128xf32> to vector<8xf32>
    %3 = vector.shape_cast %2 : vector<8xf32> to vector<8x1xf32>
    %4 = math.rsqrt %3 : vector<8x1xf32>
    %5 = vector.broadcast %4 : vector<8x1xf32> to vector<8x128xf32>
    %6 = arith.mulf %0, %5 : vector<8x128xf32>
    %c0_1 = arith.constant 0 : index
    %c0_2 = arith.constant 0 : index
    %7 = vector.load %arg2[%c0_1, %c0_2] : memref<8x128xf32, #tpu.memory_space<vmem>>, vector<8x128xf32>
    tpu.vector_store %arg2[%c0_1, %c0_2], %6 {strides = array<i32>} : memref<8x128xf32, #tpu.memory_space<vmem>>, vector<8x128xf32>,
    return
  }
  func.func @transform_0(%arg0: i32) -> (i32, i32) {
    %c0_i32 = arith.constant 0 : i32
    %c0_i32_0 = arith.constant 0 : i32
    return %arg0, %c0_i32 : i32, i32
  }
  func.func @transform_1(%arg0: i32) -> (i32, i32) {
    %c0_i32 = arith.constant 0 : i32
    %c0_i32_0 = arith.constant 0 : i32
    return %arg0, %c0_i32 : i32, i32
  }
}

</mosaic_0001>

<bundles_post_ra>
// kernel: tpu_custom_call.1
= control target key start
LH: loop header
LB: loop body
LE: loop exit
PB: predicated region body
PF: predicated region fallthrough
CT: control target
= control target key end

     0   :  { %6 = vsyncpa [#allocation3], 0  ;;  %s131_s0 = inlined_call_operand.hbm [shape: f32[8,128], index: 0, kind: input, shape index: {}]   ;;  %s132_s1 = inlined_call_operand.hbm [shape: f32[8,128], index: 1, kind: output, shape index: {}]  }
   0x1   :  { %7 = vsyncpa [#allocation4], 0  ;;  %s95_s6 = smov [#allocation2]   ;;  %s47_s10 = scalar_lea.hbm %s131_s0, 128 }
   0x2   :  { %s14_s7 = sshll.u32 %s95_s6, 4  ;;  %p48_p0 = scmp.ne.s32.totalorder %s131_s0, %s47_s10  ;;  %s15_s7 = int_to_ptr.vmem [resolvable:$true] %s14_s7 }
   0x3   :  { %p51_p1 = scmp.lt.u32.totalorder %s47_s10, %s131_s0 }
   0x5   :  { %p53_p2 = pnand %p51_p1, %p48_p0 }
   0x7   :  { %56 = shalt.err (!%p53_p2)
}
   0x8   :  { %s57_s15 = scalar_lea.vmem %s15_s7, 128  ;;  %p62_p4 = scmp.lt.s32.totalorder %s15_s7, %s15_s7 }
   0x9   :  { %p58_p3 = scmp.ne.s32.totalorder %s15_s7, %s57_s15  ;;  %p63_p5 = scmp.lt.s32.totalorder %s57_s15, %s57_s15 }
   0xb   :  { %p64_p6 = por %p63_p5, %p62_p4 }
   0xd   :  { %p65_p7 = pnand %p64_p6, %p58_p3 }
   0xf   :  { %68 = shalt.err (!%p65_p7)
}
  0x10   :  { %17 = dma.hbm_to_vmem [thread:$0]  %s131_s0, 128, %s15_s7, [#allocation3]  }
  0x11   :  { %91 = dma.done.wait [#allocation3], 128  }
  0x12   :  { %92 = vsyncadd [#allocation3], 4294967168  ;;  %v21_v0 = vld [vmem:[#allocation2] sm:$0xff]  ;;  %s96_s18 = smov [#allocation5]  }
  0x13   :  { %v22_v1 = vmul.f32 %v21_v0, %v21_v0  ;;  %s34_s19 = sshll.u32 %s96_s18, 4  ;;  %s35_s19 = int_to_ptr.vmem [resolvable:$true] %s34_s19 }
  0x14   :  { %s69_s20 = scalar_lea.vmem %s35_s19, 128  ;;  %p74_p9 = scmp.lt.s32.totalorder %s35_s19, %s35_s19 }
  0x15   :  { %23 = vadd.xlane.f32.xlu0 %v22_v1  ;;  %p70_p8 = scmp.ne.s32.totalorder %s35_s19, %s69_s20  ;;  %p75_p10 = scmp.lt.s32.totalorder %s69_s20, %s69_s20 }
  0x17   :  { %p76_p11 = por %p75_p10, %p74_p9 }
  0x19   :  { %p77_p12 = pnand %p76_p11, %p70_p8 }
  0xa2   :  { %v24_v2 = vpop.xlane.xlu0 %23 }
  0xa3   :  { %45 = vrsqrt.f32 %v24_v2 }
  0xad   :  { %v46_v3 = vpop.eup %45 }
  0xae   :  { %v26_v4 = vmul.f32 %v46_v3, %v21_v0 }
  0xb0   :  { %27 = vst [vmem:[#allocation5] sm:$0xff] %v26_v4 }
  0xb1   :  { %80 = shalt.err (!%p77_p12)
}
  0xb2   :  { %s81_s22 = scalar_lea.hbm %s132_s1, 128 }
  0xb3   :  { %p82_p13 = scmp.ne.s32.totalorder %s132_s1, %s81_s22  ;;  %p85_p0 = scmp.lt.u32.totalorder %s81_s22, %s132_s1 }
  0xb5   :  { %p87_p1 = pnand %p85_p0, %p82_p13 }
  0xb7   :  { %90 = shalt.err (!%p87_p1)
}
  0xb8   :  { %37 = dma.vmem_to_hbm [thread:$0]  %s35_s19, 128, %s132_s1, [#allocation4]  }
  0xb9   :  { %93 = dma.done.wait [#allocation4], 128  }
  0xba   :  { %94 = vsyncadd [#allocation4], 4294967168 }
  0xbb   :  { %41 = vsyncpa [#allocation3], 1 }
  0xbc   :  { %42 = vsyncpa [#allocation4], 1 }

</bundles_post_ra>
